<compile_context>
chip_gen: v7x
topology: tpu7x:2x2x1
jax: 0.10.0
libtpu: 0.0.40
codegen_flags: <defaults>
</compile_context>

<pallas_src>
import functools
from collections import abc

import jax
import jax.numpy as jnp
from jax import lax
from jax.experimental import pallas as pl
from jax.experimental.pallas import tpu as pltpu


# Contract the last dim of both operands: X (a,d), Y (b,d) -> X @ Y^T, (a,b).
_DN_NT = (((1,), (1,)), ((), ()))


def _gmc_loss_kernel(*refs, num_mods, matmul_dtype):
    """Single-step kernel computing the full GMC loss.

    refs layout:
      inv_temp_ref : SMEM (1,)        f32   -> 1 / temperature
      w_ref        : SMEM (num_mods,) f32   -> per-modality weights (ones if none)
      joint_ref    : VMEM (B, D)      matmul_dtype
      mod_refs[m]  : VMEM (B, D)      matmul_dtype, one per non-joint modality
      out_ref      : VMEM (1, 1)      f32   -> scalar loss
    """
    inv_temp_ref, w_ref, joint_ref = refs[0], refs[1], refs[2]
    mod_refs = refs[3:3 + num_mods]
    out_ref = refs[3 + num_mods]

    inv_t = inv_temp_ref[0]
    b = joint_ref.shape[0]

    joint = joint_ref[...]                              # (B, D)
    j_mx = joint.astype(matmul_dtype)
    joint_f32 = joint.astype(jnp.float32)

    # Off-diagonal mask, hoisted (VPU work, hidden under the EUP exps).
    row = lax.broadcasted_iota(jnp.int32, (b, b), 0)
    col = lax.broadcasted_iota(jnp.int32, (b, b), 1)
    offdiag = row != col

    # Joint-joint block: modality independent, computed once, diag masked exactly.
    jj = jnp.exp(inv_t * lax.dot_general(
        j_mx, j_mx, _DN_NT, preferred_element_type=jnp.float32))         # (B, B)
    jj = jnp.where(offdiag, jj, 0.0)
    jj_rowsum = jnp.sum(jj, axis=1, keepdims=True)                       # (B, 1)

    total = jnp.zeros((1, 1), jnp.float32)
    for m in range(num_mods):                                            # static unroll
        mod = mod_refs[m][...]                                           # (B, D)
        m_mx = mod.astype(matmul_dtype)

        # Cross block: row sums serve the joint rows, column sums the modality rows.
        cross = jnp.exp(inv_t * lax.dot_general(
            j_mx, m_mx, _DN_NT, preferred_element_type=jnp.float32))     # (B, B)
        mm = jnp.exp(inv_t * lax.dot_general(
            m_mx, m_mx, _DN_NT, preferred_element_type=jnp.float32))     # (B, B)
        mm = jnp.where(offdiag, mm, 0.0)

        cross_rowsum = jnp.sum(cross, axis=1, keepdims=True)   # (B,1) Σ_k exp(J_i·M_k)
        cross_colsum = jnp.sum(cross, axis=0, keepdims=True)   # (1,B) Σ_k exp(J_k·M_j)
        mm_colsum = jnp.sum(mm, axis=0, keepdims=True)         # (1,B) (mm symmetric)

        denom_joint = jj_rowsum + cross_rowsum                 # (B, 1)
        denom_mod = cross_colsum + mm_colsum                    # (1, B)

        # -log(pos/denom) == log(denom) - inv_t * <joint_i, mod_i>
        pos_dot = jnp.sum(joint_f32 * mod.astype(jnp.float32),
                          axis=-1, keepdims=True)                        # (B, 1)

        step = (jnp.sum(jnp.log(denom_joint), axis=0, keepdims=True)
                + jnp.sum(jnp.log(denom_mod), axis=1, keepdims=True)
                - 2.0 * inv_t * jnp.sum(pos_dot, axis=0, keepdims=True))  # (1, 1)

        total = total + w_ref[m] * step

    # Mean over the 2B samples of the (weighted) sum over modalities.
    out_ref[...] = total * (1.0 / float(2 * b))


def gmc_loss(batch_representations, temp, batch_size, learnable_w=None,
             matmul_dtype=jnp.bfloat16):
    """Pallas-backed equivalent of GMCLoss.forward."""
    # Glue: collapse dict-of-dict modalities by mean (same as the torch code).
    reps = {}
    for mod_name, r in batch_representations.items():
        if isinstance(r, abc.Mapping):
            r = jnp.mean(jnp.stack(list(r.values())), axis=0)
        reps[mod_name] = r
    reps = list(reps.values())

    # DMA inputs in the MXU dtype (bf16 by default) — halves input HBM traffic;
    # exp/log math stays f32 inside the kernel.
    joint = jnp.asarray(reps[-1]).astype(matmul_dtype)                   # (B, D)
    mods = [jnp.asarray(r).astype(matmul_dtype) for r in reps[:-1]]      # list of (B, D)
    num_mods = len(mods)
    b, d = joint.shape
    assert b == batch_size, "batch_size must match representation rows"

    if learnable_w is None:
        w = jnp.ones((num_mods,), jnp.float32)
    else:
        w = jnp.asarray(learnable_w, jnp.float32).reshape(num_mods)
    inv_temp = jnp.asarray([1.0 / float(temp)], jnp.float32)

    kernel = functools.partial(_gmc_loss_kernel, num_mods=num_mods,
                               matmul_dtype=matmul_dtype)

    in_specs = [
        pl.BlockSpec(memory_space=pltpu.MemorySpace.SMEM),               # inv_temp
        pl.BlockSpec(memory_space=pltpu.MemorySpace.SMEM),               # w
        pl.BlockSpec((b, d), lambda i: (0, 0)),                          # joint
    ] + [pl.BlockSpec((b, d), lambda i: (0, 0)) for _ in range(num_mods)]

    out = pl.pallas_call(
        kernel,
        out_shape=jax.ShapeDtypeStruct((1, 1), jnp.float32),
        grid_spec=pltpu.PrefetchScalarGridSpec(
            num_scalar_prefetch=0,
            grid=(1,),                         # single fused step (see TODO above)
            in_specs=in_specs,
            out_specs=pl.BlockSpec((1, 1), lambda i: (0, 0)),
        ),
        compiler_params=pltpu.CompilerParams(
            dimension_semantics=("arbitrary",)),
    )(inv_temp, w, joint, *mods)
    return out[0, 0]


def gmc_loss_ref(batch_representations, temp, batch_size, learnable_w=None):
    """Plain-JAX reference mirroring the PyTorch code, for verification."""
    reps = {}
    for mod_name, r in batch_representations.items():
        if isinstance(r, abc.Mapping):
            r = jnp.mean(jnp.stack(list(r.values())), axis=0)
        reps[mod_name] = r
    reps = list(reps.values())
    loss_list = []
    for mod in range(len(reps) - 1):
        out = jnp.concatenate([reps[-1], reps[mod]], axis=0)
        sim = jnp.exp(out @ out.T / temp)
        mask = 1.0 - jnp.eye(2 * batch_size, dtype=jnp.float32)
        denom = jnp.sum(sim * mask, axis=-1)
        pos = jnp.exp(jnp.sum(reps[-1] * reps[mod], axis=-1) / temp)
        pos = jnp.concatenate([pos, pos], axis=0)
        loss_list.append(-jnp.log(pos / denom))
    stacked = jnp.stack(loss_list)
    if learnable_w is None:
        return jnp.mean(jnp.sum(stacked, axis=0), axis=0)
    w = jnp.asarray(learnable_w, jnp.float32)
    return jnp.mean(jnp.sum(stacked * w[:, None], axis=0), axis=0)


if __name__ == "__main__":
    key = jax.random.PRNGKey(0)
    B, D = 8, 128
    k1, k2, k3, k4 = jax.random.split(key, 4)

    # Three "modalities": mod1 is itself a dict of sub-representations
    # (exercises the mean-over-views path), mod2 and joint are plain arrays.
    mod1 = {
        "view_a": 0.1 * jax.random.normal(k1, (B, D), jnp.float32),
        "view_b": 0.1 * jax.random.normal(k2, (B, D), jnp.float32),
    }
    mod2 = 0.1 * jax.random.normal(k3, (B, D), jnp.float32)
    joint = 0.1 * jax.random.normal(k4, (B, D), jnp.float32)
    batch_reprs = {"mod1": mod1, "mod2": mod2, "joint": joint}
    temp = 0.3

    # No learnable weights.
    ref = gmc_loss_ref(dict(batch_reprs), temp, B)
    loss_f32 = jax.block_until_ready(
        gmc_loss(dict(batch_reprs), temp, B, matmul_dtype=jnp.float32))
    assert jnp.allclose(loss_f32, ref, rtol=1e-4, atol=1e-4), (loss_f32, ref)
    loss_bf16 = jax.block_until_ready(gmc_loss(dict(batch_reprs), temp, B))
    assert jnp.allclose(loss_bf16, ref, rtol=5e-3, atol=5e-3), (loss_bf16, ref)

    # With learnable weights (one weight per non-joint modality).
    w = jnp.array([0.7, 1.3], jnp.float32)
    ref_w = gmc_loss_ref(dict(batch_reprs), temp, B, learnable_w=w)
    loss_w_f32 = jax.block_until_ready(
        gmc_loss(dict(batch_reprs), temp, B, learnable_w=w,
                 matmul_dtype=jnp.float32))
    assert jnp.allclose(loss_w_f32, ref_w, rtol=1e-4, atol=1e-4), (loss_w_f32, ref_w)
    loss_w_bf16 = jax.block_until_ready(
        gmc_loss(dict(batch_reprs), temp, B, learnable_w=w))
    assert jnp.allclose(loss_w_bf16, ref_w, rtol=5e-3, atol=5e-3), (loss_w_bf16, ref_w)

    print("KERNEL_OK")
</pallas_src>

<mosaic_0001>
module attributes {stable_mosaic.version = 11 : i64} {
  func.func @_gmc_loss_kernel(%arg0: i32, %arg1: memref<1xf32, #tpu.memory_space<smem>>, %arg2: memref<2xf32, #tpu.memory_space<smem>>, %arg3: memref<8x128xf32, #tpu.memory_space<vmem>>, %arg4: memref<8x128xf32, #tpu.memory_space<vmem>>, %arg5: memref<8x128xf32, #tpu.memory_space<vmem>>, %arg6: memref<1x1xf32, #tpu.memory_space<vmem>>) attributes {dimension_semantics = [#tpu.dimension_semantics<arbitrary>], iteration_bounds = array<i64: 1>, scalar_prefetch = 0 : i64, scratch_operands = 0 : i64, tpu.core_type = #tpu.core_type<tc>, window_params = [{transform_indices = @transform_0, window_bounds = array<i64: 1>}, {transform_indices = @transform_1, window_bounds = array<i64: 2>}, {pipeline_mode = #tpu.pipeline_mode<synchronous>, transform_indices = @transform_2, window_bounds = array<i64: 8, 128>}, {pipeline_mode = #tpu.pipeline_mode<synchronous>, transform_indices = @transform_3, window_bounds = array<i64: 8, 128>}, {pipeline_mode = #tpu.pipeline_mode<synchronous>, transform_indices = @transform_4, window_bounds = array<i64: 8, 128>}, {pipeline_mode = #tpu.pipeline_mode<synchronous>, transform_indices = @transform_5, window_bounds = array<i64: 1, 1>}]} {
    %c0 = arith.constant 0 : index
    %0 = memref.load %arg1[%c0] : memref<1xf32, #tpu.memory_space<smem>>
    %c0_0 = arith.constant 0 : index
    %c0_1 = arith.constant 0 : index
    %1 = vector.load %arg3[%c0_0, %c0_1] : memref<8x128xf32, #tpu.memory_space<vmem>>, vector<8x128xf32>
    %2 = tpu.iota {dimensions = array<i32: 0>} : vector<8x8xi32>
    %3 = tpu.iota {dimensions = array<i32: 1>} : vector<8x8xi32>
    %4 = arith.cmpi ne, %2, %3 : vector<8x8xi32>
    %cst = arith.constant dense<0.000000e+00> : vector<8x8xf32>
    %5 = tpu.matmul %1, %1, %cst {dimension_numbers = #tpu.dot_dimension_numbers<[1], [1], [0], [0], [0, 0, 1, 0], [], []>} : vector<8x128xf32>, vector<8x128xf32>, vector<8x8xf32> -> vector<8x8xf32>
    %6 = vector.broadcast %0 : f32 to vector<8x8xf32>
    %7 = arith.mulf %6, %5 : vector<8x8xf32>
    %8 = math.exp %7 : vector<8x8xf32>
    %cst_2 = arith.constant 0.000000e+00 : f32
    %9 = vector.broadcast %cst_2 : f32 to vector<8x8xf32>
    %10 = arith.select %4, %8, %9 : vector<8x8xi1>, vector<8x8xf32>
    %cst_3 = arith.constant dense<0.000000e+00> : vector<8xf32>
    %11 = vector.multi_reduction <add>, %10, %cst_3 [1] : vector<8x8xf32> to vector<8xf32>
    %12 = vector.shape_cast %11 : vector<8xf32> to vector<8x1xf32>
    %cst_4 = arith.constant 0.000000e+00 : f32
    %13 = vector.broadcast %cst_4 : f32 to vector<1x1xf32>
    %c0_5 = arith.constant 0 : index
    %c0_6 = arith.constant 0 : index
    %14 = vector.load %arg4[%c0_5, %c0_6] : memref<8x128xf32, #tpu.memory_space<vmem>>, vector<8x128xf32>
    %cst_7 = arith.constant dense<0.000000e+00> : vector<8x8xf32>
    %15 = tpu.matmul %1, %14, %cst_7 {dimension_numbers = #tpu.dot_dimension_numbers<[1], [1], [0], [0], [0, 0, 1, 0], [], []>} : vector<8x128xf32>, vector<8x128xf32>, vector<8x8xf32> -> vector<8x8xf32>
    %16 = vector.broadcast %0 : f32 to vector<8x8xf32>
    %17 = arith.mulf %16, %15 : vector<8x8xf32>
    %18 = math.exp %17 : vector<8x8xf32>
    %cst_8 = arith.constant dense<0.000000e+00> : vector<8x8xf32>
    %19 = tpu.matmul %14, %14, %cst_8 {dimension_numbers = #tpu.dot_dimension_numbers<[1], [1], [0], [0], [0, 0, 1, 0], [], []>} : vector<8x128xf32>, vector<8x128xf32>, vector<8x8xf32> -> vector<8x8xf32>
    %20 = vector.broadcast %0 : f32 to vector<8x8xf32>
    %21 = arith.mulf %20, %19 : vector<8x8xf32>
    %22 = math.exp %21 : vector<8x8xf32>
    %cst_9 = arith.constant 0.000000e+00 : f32
    %23 = vector.broadcast %cst_9 : f32 to vector<8x8xf32>
    %24 = arith.select %4, %22, %23 : vector<8x8xi1>, vector<8x8xf32>
    %cst_10 = arith.constant dense<0.000000e+00> : vector<8xf32>
    %25 = vector.multi_reduction <add>, %18, %cst_10 [1] : vector<8x8xf32> to vector<8xf32>
    %26 = vector.shape_cast %25 : vector<8xf32> to vector<8x1xf32>
    %cst_11 = arith.constant dense<0.000000e+00> : vector<8xf32>
    %27 = vector.multi_reduction <add>, %18, %cst_11 [0] : vector<8x8xf32> to vector<8xf32>
    %28 = vector.shape_cast %27 : vector<8xf32> to vector<1x8xf32>
    %cst_12 = arith.constant dense<0.000000e+00> : vector<8xf32>
    %29 = vector.multi_reduction <add>, %24, %cst_12 [0] : vector<8x8xf32> to vector<8xf32>
    %30 = vector.shape_cast %29 : vector<8xf32> to vector<1x8xf32>
    %31 = arith.addf %12, %26 : vector<8x1xf32>
    %32 = arith.addf %28, %30 : vector<1x8xf32>
    %33 = arith.mulf %1, %14 : vector<8x128xf32>
    %cst_13 = arith.constant dense<0.000000e+00> : vector<8xf32>
    %34 = vector.multi_reduction <add>, %33, %cst_13 [1] : vector<8x128xf32> to vector<8xf32>
    %35 = vector.shape_cast %34 : vector<8xf32> to vector<8x1xf32>
    %36 = math.log %31 : vector<8x1xf32>
    %cst_14 = arith.constant dense<0.000000e+00> : vector<1xf32>
    %37 = vector.multi_reduction <add>, %36, %cst_14 [0] : vector<8x1xf32> to vector<1xf32>
    %38 = vector.shape_cast %37 : vector<1xf32> to vector<1x1xf32>
    %39 = math.log %32 : vector<1x8xf32>
    %cst_15 = arith.constant dense<0.000000e+00> : vector<1xf32>
    %40 = vector.multi_reduction <add>, %39, %cst_15 [1] : vector<1x8xf32> to vector<1xf32>
    %41 = vector.shape_cast %40 : vector<1xf32> to vector<1x1xf32>
    %42 = arith.addf %38, %41 : vector<1x1xf32>
    %cst_16 = arith.constant 2.000000e+00 : f32
    %43 = arith.mulf %cst_16, %0 : f32
    %cst_17 = arith.constant dense<0.000000e+00> : vector<1xf32>
    %44 = vector.multi_reduction <add>, %35, %cst_17 [0] : vector<8x1xf32> to vector<1xf32>
    %45 = vector.shape_cast %44 : vector<1xf32> to vector<1x1xf32>
    %46 = vector.broadcast %43 : f32 to vector<1x1xf32>
    %47 = arith.mulf %46, %45 : vector<1x1xf32>
    %48 = arith.subf %42, %47 : vector<1x1xf32>
    %c0_18 = arith.constant 0 : index
    %49 = memref.load %arg2[%c0_18] : memref<2xf32, #tpu.memory_space<smem>>
    %50 = vector.broadcast %49 : f32 to vector<1x1xf32>
    %51 = arith.mulf %50, %48 : vector<1x1xf32>
    %52 = arith.addf %13, %51 : vector<1x1xf32>
    %c0_19 = arith.constant 0 : index
    %c0_20 = arith.constant 0 : index
    %53 = vector.load %arg5[%c0_19, %c0_20] : memref<8x128xf32, #tpu.memory_space<vmem>>, vector<8x128xf32>
    %cst_21 = arith.constant dense<0.000000e+00> : vector<8x8xf32>
    %54 = tpu.matmul %1, %53, %cst_21 {dimension_numbers = #tpu.dot_dimension_numbers<[1], [1], [0], [0], [0, 0, 1, 0], [], []>} : vector<8x128xf32>, vector<8x128xf32>, vector<8x8xf32> -> vector<8x8xf32>
    %55 = vector.broadcast %0 : f32 to vector<8x8xf32>
    %56 = arith.mulf %55, %54 : vector<8x8xf32>
    %57 = math.exp %56 : vector<8x8xf32>
    %cst_22 = arith.constant dense<0.000000e+00> : vector<8x8xf32>
    %58 = tpu.matmul %53, %53, %cst_22 {dimension_numbers = #tpu.dot_dimension_numbers<[1], [1], [0], [0], [0, 0, 1, 0], [], []>} : vector<8x128xf32>, vector<8x128xf32>, vector<8x8xf32> -> vector<8x8xf32>
    %59 = vector.broadcast %0 : f32 to vector<8x8xf32>
    %60 = arith.mulf %59, %58 : vector<8x8xf32>
    %61 = math.exp %60 : vector<8x8xf32>
    %cst_23 = arith.constant 0.000000e+00 : f32
    %62 = vector.broadcast %cst_23 : f32 to vector<8x8xf32>
    %63 = arith.select %4, %61, %62 : vector<8x8xi1>, vector<8x8xf32>
    %cst_24 = arith.constant dense<0.000000e+00> : vector<8xf32>
    %64 = vector.multi_reduction <add>, %57, %cst_24 [1] : vector<8x8xf32> to vector<8xf32>
    %65 = vector.shape_cast %64 : vector<8xf32> to vector<8x1xf32>
    %cst_25 = arith.constant dense<0.000000e+00> : vector<8xf32>
    %66 = vector.multi_reduction <add>, %57, %cst_25 [0] : vector<8x8xf32> to vector<8xf32>
    %67 = vector.shape_cast %66 : vector<8xf32> to vector<1x8xf32>
    %cst_26 = arith.constant dense<0.000000e+00> : vector<8xf32>
    %68 = vector.multi_reduction <add>, %63, %cst_26 [0] : vector<8x8xf32> to vector<8xf32>
    %69 = vector.shape_cast %68 : vector<8xf32> to vector<1x8xf32>
    %70 = arith.addf %12, %65 : vector<8x1xf32>
    %71 = arith.addf %67, %69 : vector<1x8xf32>
    %72 = arith.mulf %1, %53 : vector<8x128xf32>
    %cst_27 = arith.constant dense<0.000000e+00> : vector<8xf32>
    %73 = vector.multi_reduction <add>, %72, %cst_27 [1] : vector<8x128xf32> to vector<8xf32>
    %74 = vector.shape_cast %73 : vector<8xf32> to vector<8x1xf32>
    %75 = math.log %70 : vector<8x1xf32>
    %cst_28 = arith.constant dense<0.000000e+00> : vector<1xf32>
    %76 = vector.multi_reduction <add>, %75, %cst_28 [0] : vector<8x1xf32> to vector<1xf32>
    %77 = vector.shape_cast %76 : vector<1xf32> to vector<1x1xf32>
    %78 = math.log %71 : vector<1x8xf32>
    %cst_29 = arith.constant dense<0.000000e+00> : vector<1xf32>
    %79 = vector.multi_reduction <add>, %78, %cst_29 [1] : vector<1x8xf32> to vector<1xf32>
    %80 = vector.shape_cast %79 : vector<1xf32> to vector<1x1xf32>
    %81 = arith.addf %77, %80 : vector<1x1xf32>
    %cst_30 = arith.constant 2.000000e+00 : f32
    %82 = arith.mulf %cst_30, %0 : f32
    %cst_31 = arith.constant dense<0.000000e+00> : vector<1xf32>
    %83 = vector.multi_reduction <add>, %74, %cst_31 [0] : vector<8x1xf32> to vector<1xf32>
    %84 = vector.shape_cast %83 : vector<1xf32> to vector<1x1xf32>
    %85 = vector.broadcast %82 : f32 to vector<1x1xf32>
    %86 = arith.mulf %85, %84 : vector<1x1xf32>
    %87 = arith.subf %81, %86 : vector<1x1xf32>
    %c1 = arith.constant 1 : index
    %88 = memref.load %arg2[%c1] : memref<2xf32, #tpu.memory_space<smem>>
    %89 = vector.broadcast %88 : f32 to vector<1x1xf32>
    %90 = arith.mulf %89, %87 : vector<1x1xf32>
    %91 = arith.addf %52, %90 : vector<1x1xf32>
    %cst_32 = arith.constant 6.250000e-02 : f32
    %92 = vector.broadcast %cst_32 : f32 to vector<1x1xf32>
    %93 = arith.mulf %91, %92 : vector<1x1xf32>
    %c0_33 = arith.constant 0 : index
    %c0_34 = arith.constant 0 : index
    %94 = vector.load %arg6[%c0_33, %c0_34] : memref<1x1xf32, #tpu.memory_space<vmem>>, vector<1x1xf32>
    tpu.vector_store %arg6[%c0_33, %c0_34], %93 {strides = array<i32>} : memref<1x1xf32, #tpu.memory_space<vmem>>, vector<1x1xf32>,
    return
  }
  func.func @transform_0(%arg0: i32) -> i32 {
    %c0_i32 = arith.constant 0 : i32
    %c0_i32_0 = arith.constant 0 : i32
    return %c0_i32 : i32
  }
  func.func @transform_1(%arg0: i32) -> i32 {
    %c0_i32 = arith.constant 0 : i32
    %c0_i32_0 = arith.constant 0 : i32
    return %c0_i32 : i32
  }
  func.func @transform_2(%arg0: i32) -> (i32, i32) {
    %c0_i32 = arith.constant 0 : i32
    %c0_i32_0 = arith.constant 0 : i32
    %c0_i32_1 = arith.constant 0 : i32
    return %c0_i32, %c0_i32_0 : i32, i32
  }
  func.func @transform_3(%arg0: i32) -> (i32, i32) {
    %c0_i32 = arith.constant 0 : i32
    %c0_i32_0 = arith.constant 0 : i32
    %c0_i32_1 = arith.constant 0 : i32
    return %c0_i32, %c0_i32_0 : i32, i32
  }
  func.func @transform_4(%arg0: i32) -> (i32, i32) {
    %c0_i32 = arith.constant 0 : i32
    %c0_i32_0 = arith.constant 0 : i32
    %c0_i32_1 = arith.constant 0 : i32
    return %c0_i32, %c0_i32_0 : i32, i32
  }
  func.func @transform_5(%arg0: i32) -> (i32, i32) {
    %c0_i32 = arith.constant 0 : i32
    %c0_i32_0 = arith.constant 0 : i32
    %c0_i32_1 = arith.constant 0 : i32
    return %c0_i32, %c0_i32_0 : i32, i32
  }
}

</mosaic_0001>

<bundles_post_ra>
// kernel: tpu_custom_call.1
= control target key start
LH: loop header
LB: loop body
LE: loop exit
PB: predicated region body
PF: predicated region fallthrough
CT: control target
= control target key end

     0   :  { %11 = vsyncpa [#allocation6], 0  ;;  %s822_s0 = inlined_call_operand.<no memory space> [shape: f32[1], index: 0, kind: input, shape index: {}]   ;;  %s823_s1 = inlined_call_operand.vmem [shape: f32[2], index: 1, kind: input, shape index: {}]   ;;  %s824_s2 = inlined_call_operand.hbm [shape: f32[8,128], index: 2, kind: input, shape index: {}]   ;;  %s825_s3 = inlined_call_operand.vmem [shape: f32[8,128], index: 3, kind: input, shape index: {}]   ;;  %s826_s4 = inlined_call_operand.hbm [shape: f32[8,128], index: 4, kind: input, shape index: {}]   ;;  %s827_s5 = inlined_call_operand.hbm [shape: f32[1,1], index: 5, kind: output, shape index: {}]  }
   0x1   :  { %12 = vsyncpa [#allocation4], 0 }
   0x2   :  { %13 = vsyncpa [#allocation9], 0 }
   0x3   :  { %14 = vsyncpa [#allocation5], 0  ;;  %s23_s20 = sshll.u32 %s823_s1, 4  ;;  %s24_s20 = int_to_ptr.vmem [resolvable:$true] %s23_s20 }
   0x4   :  { %s617_s21 = scalar_lea.vmem %s24_s20, 16  ;;  %p622_p1 = scmp.lt.s32.totalorder %s24_s20, %s24_s20 }
   0x5   :  { %p618_p0 = scmp.ne.s32.totalorder %s24_s20, %s617_s21  ;;  %p623_p2 = scmp.lt.s32.totalorder %s617_s21, %s617_s21 }
   0x7   :  { %p624_p3 = por %p623_p2, %p622_p1 }
   0x9   :  { %p625_p4 = pnand %p624_p3, %p618_p0 }
   0xb   :  { %628 = shalt.err (!%p625_p4)
}
   0xc   :  { %s703_s22 = smov [#allocation3]   ;;  %s704_s23 = smov [#allocation7]  }
   0xd   :  { %26 = dma.vmem_to_smem %s24_s20, 16, %s703_s22, [#allocation6]  }
   0xe   :  { %s33_s24 = sshll.u32 %s704_s23, 4  ;;  %s705_s25 = smov [#allocation8]   ;;  %s34_s24 = int_to_ptr.vmem [resolvable:$true] %s33_s24 }
   0xf   :  { %s45_s26 = sshll.u32 %s705_s25, 4  ;;  %s629_s29 = scalar_lea.hbm %s824_s2, 128  ;;  %s46_s26 = int_to_ptr.vmem [resolvable:$true] %s45_s26 }
  0x10   :  { %p630_p5 = scmp.ne.s32.totalorder %s824_s2, %s629_s29  ;;  %p633_p6 = scmp.lt.u32.totalorder %s629_s29, %s824_s2 }
  0x12   :  { %p635_p7 = pnand %p633_p6, %p630_p5 }
  0x14   :  { %638 = shalt.err (!%p635_p7)
}
  0x15   :  { %s639_s8 = scalar_lea.vmem %s34_s24, 128  ;;  %p644_p9 = scmp.lt.s32.totalorder %s34_s24, %s34_s24 }
  0x16   :  { %p640_p8 = scmp.ne.s32.totalorder %s34_s24, %s639_s8  ;;  %p645_p10 = scmp.lt.s32.totalorder %s639_s8, %s639_s8 }
  0x18   :  { %p646_p11 = por %p645_p10, %p644_p9 }
  0x1a   :  { %p647_p12 = pnand %p646_p11, %p640_p8 }
  0x1c   :  { %650 = shalt.err (!%p647_p12)
}
  0x1d   :  { %36 = dma.hbm_to_vmem [thread:$0]  %s824_s2, 128, %s34_s24, [#allocation4]  }
  0x1e   :  { %s651_s13 = scalar_lea.hbm %s826_s4, 128 }
  0x1f   :  { %p652_p13 = scmp.ne.s32.totalorder %s826_s4, %s651_s13  ;;  %p655_p0 = scmp.lt.u32.totalorder %s651_s13, %s826_s4 }
  0x21   :  { %p657_p1 = pnand %p655_p0, %p652_p13 }
  0x23   :  { %660 = shalt.err (!%p657_p1)
}
  0x24   :  { %s661_s18 = scalar_lea.vmem %s46_s26, 128  ;;  %p666_p3 = scmp.lt.s32.totalorder %s46_s26, %s46_s26 }
  0x25   :  { %p662_p2 = scmp.ne.s32.totalorder %s46_s26, %s661_s18  ;;  %p667_p4 = scmp.lt.s32.totalorder %s661_s18, %s661_s18 }
  0x27   :  { %p668_p5 = por %p667_p4, %p666_p3 }
  0x29   :  { %p669_p6 = pnand %p668_p5, %p662_p2 }
  0x2b   :  { %672 = shalt.err (!%p669_p6)
}
  0x2c   :  { %48 = dma.hbm_to_vmem [thread:$0]  %s826_s4, 128, %s46_s26, [#allocation9]  }
  0x2d   :  { %695 = dma.done.wait [#allocation6], 16  }
  0x2e   :  { %696 = vsyncadd [#allocation6], 4294967280 }
  0x2f   :  { %697 = dma.done.wait [#allocation4], 128  }
  0x30   :  { %698 = vsyncadd [#allocation4], 4294967168 }
  0x31   :  { %699 = dma.done.wait [#allocation9], 128  }
  0x32   :  { %700 = vsyncadd [#allocation9], 4294967168 }
  0x33   :  { %58 = sfence }
  0x34   :  { %v766_v0 = vld [vmem:[#allocation7] sm:$0xff]  ;;  %v706_v2 = vmov 0.0   ;;  %vm707_vm0 = vmmov 0   ;;  %v777_v3 = vld [vmem:[#allocation8] sm:$0xff]  ;;  %v136_v4 = vstv %s822_s0  ;;  %v61_v19 = vlaneseq  ;;  %s328_s24 = smul.f32 2.0, %s822_s0  ;;  %s338_s25 = sld [smem:[#allocation3]] }
  0x35   :  { %v771_v1 = vld [vmem:[%s825_s3] sm:$0xff]  ;;  %568 = vmatprep.subr.mxu0 %v706_v2  ;;  %573 = vmatprep.subr.mxu1 %v706_v2  ;;  %vm141_vm2 = vcmask 64512   ;;  %v508_v44 = vmul.f32 %v777_v3, %v766_v0  ;;  %s557_s26 = sld [smem:[#allocation3 + $0x1]]  ;;  %s708_s0 = smov [#allocation10]   ;;  %vm538_vm3 = vcmask 0  }
  0x36   :  { %569 = vmatpush3.xpose.msra.mxu0 %v766_v0  ;;  %574 = vmatpush3.xpose.msra.mxu1 %v771_v1  ;;  %v62_v25 = vshrl.u32 %v61_v19, 7  ;;  %v64_v26 = vand.u32 127, %v61_v19  ;;  %v311_v40 = vmul.f32 %v771_v1, %v766_v0  ;;  %s546_s27 = sshll.u32 %s708_s0, 4  ;;  %s547_s27 = int_to_ptr.vmem [resolvable:$true] %s546_s27 }
  0x37   :  { %570 = vmatprep.mubr.msk.f32.mxu0 %vm707_vm0, %v706_v2  ;;  %575 = vmatprep.mubr.msk.f32.mxu1 %vm707_vm0, %v706_v2  ;;  %s673_s28 = scalar_lea.vmem %s547_s27, 16  ;;  %s677_s29 = scalar_lea.vmem %s547_s27, 32 }
  0x38   :  { %578 = vmatprep.subr.mxu0 %v706_v2  ;;  %583 = vmatprep.subr.mxu1 %v706_v2  ;;  %vm65_vm1 = vcmp.ne.s32.totalorder %v62_v25, %v64_v26  ;;  %p674_p7 = scmp.ne.s32.totalorder %s547_s27, %s673_s28  ;;  %p678_p8 = scmp.lt.s32.totalorder %s547_s27, %s547_s27 }
  0x39   :  { %571 = vmatmul.mubr.f32.vlgmr.msra.gmra.mrb[0].mxu0 %v766_v0  ;;  %576 = vmatmul.mubr.f32.vlgmr.msra.gmra.mrb[0].mxu1 %v766_v0  ;;  %p679_p9 = scmp.lt.s32.totalorder %s677_s29, %s673_s28 }
  0x3a   :  { %579 = vmatpush3.xpose.msra.mxu0 %v771_v1  ;;  %584 = vmatpush3.xpose.msra.mxu1 %v777_v3 }
  0x3b   :  { %580 = vmatprep.mubr.msk.f32.mxu0 %vm707_vm0, %v706_v2  ;;  %585 = vmatprep.mubr.msk.f32.mxu1 %vm707_vm0, %v706_v2  ;;  %p680_p10 = por %p679_p9, %p678_p8 }
  0x3c   :  { %588 = vmatprep.subr.mxu0 %v706_v2 }
  0x3d   :  { %581 = vmatmul.mubr.f32.vlgmr.msra.gmra.mrb[2].mxu0 %v771_v1  ;;  %586 = vmatmul.mubr.f32.vlgmr.msra.gmra.mrb[2].mxu1 %v766_v0  ;;  %p681_p11 = pnand %p680_p10, %p674_p7 }
  0x3e   :  { %589 = vmatpush3.xpose.msra.mxu0 %v777_v3  ;;  %590 = vmatprep.mubr.msk.f32.mxu0 %vm707_vm0, %v706_v2 }
  0x41   :  { %591 = vmatmul.mubr.f32.vlgmr.msra.gmra.mrb[4].mxu0 %v777_v3 }
 0x10c   :  { %v132_v5 = vpop.f32.mrb[0].mxu0  ;;  %v212_v6 = vpop.f32.mrb[0].mxu1 }
 0x10d   :  { %v137_v7 = vmul.f32 %v136_v4, %v132_v5  ;;  %v216_v8 = vmul.f32 %v212_v6, %v136_v4  ;;  %v572_v9 = vpop.f32.mrb[1].mxu0  ;;  %v577_v10 = vpop.f32.mrb[1].mxu1 }
 0x10f   :  { %v138_v11 = vmul.f32 1.442695, %v137_v7  ;;  %v217_v12 = vmul.f32 1.442695, %v216_v8 }
 0x110   :  { %v285_v13 = vpop.f32.mrb[2].mxu0  ;;  %v409_v14 = vpop.f32.mrb[2].mxu1 }
 0x111   :  { %599 = vpow2.f32 %v138_v11  ;;  %v289_v15 = vmul.f32 %v285_v13, %v136_v4  ;;  %v413_v16 = vmul.f32 %v409_v14, %v136_v4  ;;  %v582_v17 = vpop.f32.mrb[3].mxu0  ;;  %v587_v18 = vpop.f32.mrb[3].mxu1 }
 0x112   :  { %601 = vpow2.f32 %v217_v12 }
 0x113   :  { %v290_v20 = vmul.f32 1.442695, %v289_v15  ;;  %v414_v21 = vmul.f32 1.442695, %v413_v16 }
 0x114   :  { %v482_v22 = vpop.f32.mrb[4].mxu0 }
 0x115   :  { %603 = vpow2.f32 %v290_v20  ;;  %v486_v23 = vmul.f32 %v482_v22, %v136_v4  ;;  %v592_v24 = vpop.f32.mrb[5].mxu0 }
 0x116   :  { %605 = vpow2.f32 %v414_v21 }
 0x117   :  { %v487_v27 = vmul.f32 1.442695, %v486_v23 }
 0x119   :  { %607 = vpow2.f32 %v487_v27 }
 0x11b   :  { %v600_v28 = vpop.eup %599 }
 0x11c   :  { %v602_v29 = vpop.eup %601  ;;  %v140_v30 = vsel %vm65_vm1, %v600_v28, 0.0 }
 0x11d   :  { %v142_v31 = vsel %vm141_vm2, %v140_v30, 0.0  ;;  %v293_v32 = vsel %vm141_vm2, %v602_v29, 0.0 }
 0x11e   :  { %143 = vadd.xlane.f32.xlu0 %v142_v31  ;;  %v296_v33 = vrot.slane %v293_v32, 4 }
 0x11f   :  { %v604_v34 = vpop.eup %603 }
 0x120   :  { %v606_v35 = vpop.eup %605  ;;  %v292_v36 = vsel %vm65_vm1, %v604_v34, 0.0  ;;  %v297_v37 = vadd.f32 %v296_v33, %v293_v32 }
 0x121   :  { %v302_v38 = vsel %vm141_vm2, %v292_v36, 0.0  ;;  %v490_v39 = vsel %vm141_vm2, %v606_v35, 0.0 }
 0x122   :  { %v303_v41 = vrot.slane %v302_v38, 4  ;;  %491 = vadd.xlane.f32.xlu1 %v490_v39  ;;  %v493_v42 = vrot.slane %v490_v39, 4  ;;  %v298_v43 = vrot.slane %v297_v37, 2  ;;  %294 = vadd.xlane.f32.xlu0 %v293_v32 }
 0x123   :  { %v608_v45 = vpop.eup %607 }
 0x124   :  { %v304_v46 = vadd.f32 %v303_v41, %v302_v38  ;;  %v489_v47 = vsel %vm65_vm1, %v608_v45, 0.0  ;;  %v494_v48 = vadd.f32 %v493_v42, %v490_v39  ;;  %v299_v49 = vadd.f32 %v298_v43, %v297_v37 }
 0x125   :  { %v499_v50 = vsel %vm141_vm2, %v489_v47, 0.0 }
 0x126   :  { %v305_v51 = vrot.slane %v304_v46, 2  ;;  %v500_v52 = vrot.slane %v499_v50, 4  ;;  %v495_v53 = vrot.slane %v494_v48, 2  ;;  %312 = vadd.xlane.f32.xlu1 %v311_v40  ;;  %509 = vadd.xlane.f32.xlu0 %v508_v44  ;;  %v300_v57 = vrot.slane %v299_v49, 1 }
 0x127   :  { %v335_v44 = vstv %s328_s24 }
 0x128   :  { %v306_v54 = vadd.f32 %v305_v51, %v304_v46  ;;  %v501_v55 = vadd.f32 %v500_v52, %v499_v50  ;;  %v496_v56 = vadd.f32 %v495_v53, %v494_v48  ;;  %v301_v62 = vadd.f32 %v300_v57, %v299_v49 }
 0x12a   :  { %v502_v58 = vrot.slane %v501_v55, 2  ;;  %v307_v59 = vrot.slane %v306_v54, 1  ;;  %v497_v61 = vrot.slane %v496_v56, 1 }
 0x12c   :  { %v503_v60 = vadd.f32 %v502_v58, %v501_v55  ;;  %v308_v63 = vadd.f32 %v307_v59, %v306_v54  ;;  %v498_v2 = vadd.f32 %v497_v61, %v496_v56  ;;  %v339_v54 = vstv %s338_s25 }
 0x12d   :  { %v534_v55 = vstv %s557_s26 }
 0x12e   :  { %v310_v0 = vadd.f32 %v308_v63, %v301_v62  ;;  %v504_v1 = vrot.slane %v503_v60, 1 }
 0x130   :  { %609 = vlog2.f32 %v310_v0  ;;  %v505_v3 = vadd.f32 %v504_v1, %v503_v60 }
 0x132   :  { %v507_v4 = vadd.f32 %v505_v3, %v498_v2 }
 0x134   :  { %611 = vlog2.f32 %v507_v4 }
 0x13a   :  { %v610_v5 = vpop.eup %609 }
 0x13b   :  { %v323_v6 = vmul.f32 0.6931472, %v610_v5 }
 0x13d   :  { %v324_v7 = vsel %vm141_vm2, %v323_v6, 0.0 }
 0x13e   :  { %v612_v8 = vpop.eup %611  ;;  %325 = vadd.xlane.f32.xlu1 %v324_v7 }
 0x13f   :  { %v520_v9 = vmul.f32 0.6931472, %v612_v8 }
 0x141   :  { %v521_v10 = vsel %vm141_vm2, %v520_v9, 0.0 }
 0x142   :  { %522 = vadd.xlane.f32.xlu0 %v521_v10 }
 0x1ab   :  { %v144_v11 = vpop.xlane.xlu0 %143 }
 0x1af   :  { %v492_v12 = vpop.xlane.xlu1 %491  ;;  %v295_v13 = vpop.xlane.xlu0 %294 }
 0x1b0   :  { %v506_v14 = vadd.f32 %v492_v12, %v144_v11  ;;  %v309_v15 = vadd.f32 %v295_v13, %v144_v11 }
 0x1b2   :  { %613 = vlog2.f32 %v506_v14 }
 0x1b3   :  { %615 = vlog2.f32 %v309_v15  ;;  %v313_v16 = vpop.xlane.xlu1 %312  ;;  %v510_v17 = vpop.xlane.xlu0 %509 }
 0x1b4   :  { %v329_v18 = vrot.slane %v313_v16, 4  ;;  %v525_v19 = vrot.slane %v510_v17, 4 }
 0x1b6   :  { %v330_v20 = vadd.f32 %v329_v18, %v313_v16  ;;  %v526_v22 = vadd.f32 %v525_v19, %v510_v17 }
 0x1b8   :  { %v331_v26 = vrot.slane %v330_v20, 2  ;;  %v527_v29 = vrot.slane %v526_v22, 2 }
 0x1ba   :  { %v332_v32 = vadd.f32 %v331_v26, %v330_v20  ;;  %v528_v34 = vadd.f32 %v527_v29, %v526_v22 }
 0x1bc   :  { %v614_v21 = vpop.eup %613  ;;  %v333_v36 = vrot.slane %v332_v32, 1  ;;  %v529_v39 = vrot.slane %v528_v34, 1 }
 0x1bd   :  { %v616_v23 = vpop.eup %615  ;;  %v512_v24 = vmul.f32 0.6931472, %v614_v21 }
 0x1be   :  { %v315_v25 = vmul.f32 0.6931472, %v616_v23  ;;  %v334_v41 = vadd.f32 %v333_v36, %v332_v32  ;;  %v530_v46 = vadd.f32 %v529_v39, %v528_v34 }
 0x1bf   :  { %v513_v27 = vrot.slane %v512_v24, 4 }
 0x1c0   :  { %v316_v28 = vrot.slane %v315_v25, 4  ;;  %v336_v48 = vmul.f32 %v335_v44, %v334_v41  ;;  %v531_v52 = vmul.f32 %v530_v46, %v335_v44 }
 0x1c1   :  { %v514_v30 = vadd.f32 %v513_v27, %v512_v24 }
 0x1c2   :  { %v317_v31 = vadd.f32 %v316_v28, %v315_v25 }
 0x1c3   :  { %v515_v33 = vrot.slane %v514_v30, 2 }
 0x1c4   :  { %v318_v35 = vrot.slane %v317_v31, 2 }
 0x1c5   :  { %v516_v38 = vadd.f32 %v515_v33, %v514_v30 }
 0x1c6   :  { %v319_v37 = vadd.f32 %v318_v35, %v317_v31 }
 0x1c7   :  { %v517_v43 = vrot.slane %v516_v38, 1 }
 0x1c8   :  { %v320_v40 = vrot.slane %v319_v37, 1 }
 0x1c9   :  { %v518_v49 = vadd.f32 %v517_v43, %v516_v38 }
 0x1ca   :  { %v321_v42 = vadd.f32 %v320_v40, %v319_v37 }
 0x1cb   :  { %v326_v45 = vpop.xlane.xlu1 %325 }
 0x1cc   :  { %v327_v47 = vadd.f32 %v326_v45, %v321_v42 }
 0x1ce   :  { %v337_v51 = vsub.f32 %v327_v47, %v336_v48 }
 0x1cf   :  { %v523_v50 = vpop.xlane.xlu0 %522 }
 0x1d0   :  { %v524_v53 = vadd.f32 %v523_v50, %v518_v49  ;;  %v340_v57 = vmul.f32 %v339_v54, %v337_v51 }
 0x1d2   :  { %v532_v56 = vsub.f32 %v524_v53, %v531_v52 }
 0x1d4   :  { %v535_v58 = vmul.f32 %v534_v55, %v532_v56 }
 0x1d6   :  { %v536_v59 = vadd.f32 %v535_v58, %v340_v57 }
 0x1d8   :  { %v537_v60 = vmul.f32 0.0625, %v536_v59 }
 0x1da   :  { %539 = vst.msk [vmem:[#allocation10] sm:$0x1] %vm538_vm3, %v537_v60 }
 0x1db   :  { %684 = shalt.err (!%p681_p11)
}
 0x1dc   :  { %s685_s6 = scalar_lea.hbm %s827_s5, 16 }
 0x1dd   :  { %p686_p12 = scmp.ne.s32.totalorder %s827_s5, %s685_s6  ;;  %p689_p13 = scmp.lt.u32.totalorder %s685_s6, %s827_s5 }
 0x1df   :  { %p691_p0 = pnand %p689_p13, %p686_p12 }
 0x1e1   :  { %694 = shalt.err (!%p691_p0)
}
 0x1e2   :  { %549 = dma.vmem_to_hbm [thread:$0]  %s547_s27, 16, %s827_s5, [#allocation5]  }
 0x1e3   :  { %701 = dma.done.wait [#allocation5], 16  }
 0x1e4   :  { %702 = vsyncadd [#allocation5], 4294967280 }
 0x1e5   :  { %553 = vsyncpa [#allocation4], 1 }
 0x1e6   :  { %554 = vsyncpa [#allocation9], 1 }
 0x1e7   :  { %555 = vsyncpa [#allocation5], 1 }
 0x1e8   :  { %556 = vsyncpa [#allocation6], 1 }

</bundles_post_ra>
